<compile_context>
chip_gen: v6e
topology: v6e:2x2x1
jax: 0.10.0
libtpu: 0.0.40
codegen_flags: <defaults>
</compile_context>

<pallas_src>
import functools

import jax
import jax.numpy as jnp
from jax.experimental import pallas as pl
from jax.experimental.pallas import tpu as pltpu

LANE = 128


def _round_up(x, m):
    return (x + m - 1) // m * m


def _aggregate_kernel(adj_ref, s_ref, out_ref, acc_ref, *, apply_celu):
    """One (row-tile i, K-tile k) step of out = [CELU?](A @ S).

    adj_ref : [TM, TK]  bf16 tile of the normalized adjacency
    s_ref   : [TK, Hp]  bf16 tile of the support matrix (Hp % 128 == 0)
    out_ref : [TM, Hp]  f32 output row tile (resident across the k axis)
    acc_ref : [TM, Hp]  f32 VMEM accumulator scratch
    """
    k = pl.program_id(1)

    @pl.when(k == 0)
    def _():
        acc_ref[...] = jnp.zeros_like(acc_ref)

    acc_ref[...] += jnp.dot(
        adj_ref[...], s_ref[...], preferred_element_type=jnp.float32
    )

    @pl.when(k == pl.num_programs(1) - 1)
    def _():
        r = acc_ref[...]
        if apply_celu:
            # CELU(alpha=1): x if x > 0 else exp(x) - 1, applied only on the
            # fully accumulated sum (never on a partial K sum).
            # exp(min(x,0)) - 1 is used instead of expm1: its Mosaic lowering
            # is guaranteed, and the absolute error near 0 (~f32 eps) is far
            # below the bf16 input quantization of this kernel.
            r = jnp.where(r > 0.0, r, jnp.exp(jnp.minimum(r, 0.0)) - 1.0)
        out_ref[...] = r.astype(out_ref.dtype)


def _aggregate(adj_bf16, s_bf16, *, apply_celu, tm=128, tk=128):
    """out[Np, Hp] (f32) = [CELU?](A @ S) with a tiled, pipelined grid.

    adj_bf16 : [Np, Np] bf16, Np divisible by tm and tk
    s_bf16   : [Np, Hp] bf16, Hp a multiple of 128 (lane dense)
    """
    Np = adj_bf16.shape[0]
    Hp = s_bf16.shape[1]
    assert Np % tm == 0 and Np % tk == 0 and Hp % LANE == 0

    grid = (Np // tm, Np // tk)

    # Advisory cost estimate so XLA schedules the hoisted weight matmuls /
    # padding around the custom call instead of serializing.
    cost = pl.CostEstimate(
        flops=2 * Np * Np * Hp,
        transcendentals=(Np * Hp) if apply_celu else 0,
        bytes_accessed=(Np * Np * 2) + (Np * Hp * 2) * grid[0] + (Np * Hp * 4),
    )

    kernel = functools.partial(_aggregate_kernel, apply_celu=apply_celu)

    return pl.pallas_call(
        kernel,
        out_shape=jax.ShapeDtypeStruct((Np, Hp), jnp.float32),
        grid_spec=pltpu.PrefetchScalarGridSpec(
            num_scalar_prefetch=0,
            grid=grid,
            in_specs=[
                pl.BlockSpec((tm, tk), lambda i, k: (i, k)),   # A row/col tile
                pl.BlockSpec((tk, Hp), lambda i, k: (k, 0)),   # S K tile
            ],
            out_specs=pl.BlockSpec((tm, Hp), lambda i, k: (i, 0)),
            scratch_shapes=[pltpu.VMEM((tm, Hp), jnp.float32)],
        ),
        compiler_params=pltpu.CompilerParams(
            # Row-tile axis can be sharded across TensorCores (v7x megacore);
            # the K axis is a reduction -> arbitrary.
            dimension_semantics=("parallel", "arbitrary"),
        ),
        cost_estimate=cost,
    )(adj_bf16, s_bf16)


def grace_forward(x, adj, w1, w2, *, tm=128, tk=128):
    """GRACE.forward(x, edges): unsqueeze + 2-layer GCN encoder.

    x   : [N, F]  node features (f32)
    adj : [N, N]  normalized dense adjacency D^-1/2 (A+I) D^-1/2 (f32)
    w1  : [F, H]  layer-1 weight
    w2  : [H, H]  layer-2 weight
    returns [1, N, H]
    """
    N, _ = x.shape
    H = w2.shape[1]

    Np = _round_up(N, max(tm, tk))
    Hp = _round_up(H, LANE)

    # Pad A once, cast to bf16 once, reuse for both layers (A dominates HBM
    # traffic; zero padding rows/cols does not change the first N rows).
    adj_p = jnp.pad(adj, ((0, Np - N), (0, Np - N))).astype(jnp.bfloat16)

    # ---- layer 1: S1 = X @ W1 (hoisted, tiny K), h1 = CELU(A @ S1) ----------
    s1 = jnp.dot(x, w1, preferred_element_type=jnp.float32)          # [N, H]
    s1_p = jnp.pad(s1, ((0, Np - N), (0, Hp - H))).astype(jnp.bfloat16)
    h1_p = _aggregate(adj_p, s1_p, apply_celu=True, tm=tm, tk=tk)    # [Np, Hp]
    h1 = h1_p[:N, :H]

    # ---- layer 2: S2 = h1 @ W2 (hoisted), z = A @ S2 ------------------------
    s2 = jnp.dot(h1, w2, preferred_element_type=jnp.float32)         # [N, H]
    s2_p = jnp.pad(s2, ((0, Np - N), (0, Hp - H))).astype(jnp.bfloat16)
    z_p = _aggregate(adj_p, s2_p, apply_celu=False, tm=tm, tk=tk)    # [Np, Hp]
    z = z_p[:N, :H]

    # x.unsqueeze(dim=0) in the PyTorch forward -> leading batch dim of 1.
    return z[None, :, :]


def build_normalized_adjacency(key, num_nodes, p_edge=0.1):
    """Glue (plain JAX): random symmetric adjacency + self loops, D^-1/2 A D^-1/2."""
    raw = jax.random.uniform(key, (num_nodes, num_nodes))
    a = (raw < p_edge).astype(jnp.float32)
    a = jnp.maximum(a, a.T)                        # symmetric
    a = a + jnp.eye(num_nodes, dtype=jnp.float32)  # self loops
    deg = jnp.sum(a, axis=1)
    d_inv_sqrt = 1.0 / jnp.sqrt(deg)
    return a * d_inv_sqrt[:, None] * d_inv_sqrt[None, :]


if __name__ == "__main__":
    # Small shapes consistent with the module: num_in=32, num_hidden=32.
    # N=256 so the tiled grid (2 row tiles x 2 K tiles) is actually exercised.
    N, NUM_IN, NUM_HIDDEN = 256, 32, 32

    key = jax.random.PRNGKey(0)
    k_x, k_adj, k_w1, k_w2 = jax.random.split(key, 4)

    x = jax.random.normal(k_x, (N, NUM_IN), dtype=jnp.float32)
    adj = build_normalized_adjacency(k_adj, N)

    # Deterministic parameter init (Glorot-ish scaling), no checkpoint load.
    w1 = jax.random.normal(k_w1, (NUM_IN, NUM_HIDDEN), dtype=jnp.float32) * (
        1.0 / jnp.sqrt(jnp.float32(NUM_IN))
    )
    w2 = jax.random.normal(k_w2, (NUM_HIDDEN, NUM_HIDDEN), dtype=jnp.float32) * (
        1.0 / jnp.sqrt(jnp.float32(NUM_HIDDEN))
    )

    out = grace_forward(x, adj, w1, w2)
    jax.block_until_ready(out)

    # Pure-JAX reference of the same math with the same bf16 quantization of
    # A and the support matrices (kernel accumulates in f32).
    def _celu(v):
        return jnp.where(v > 0.0, v, jnp.exp(jnp.minimum(v, 0.0)) - 1.0)

    adj_b = adj.astype(jnp.bfloat16).astype(jnp.float32)
    s1_b = (x @ w1).astype(jnp.bfloat16).astype(jnp.float32)
    h1_ref = _celu(adj_b @ s1_b)
    s2_b = (h1_ref @ w2).astype(jnp.bfloat16).astype(jnp.float32)
    z_ref = (adj_b @ s2_b)[None]

    assert out.shape == (1, N, NUM_HIDDEN)
    assert jnp.allclose(out, z_ref, atol=5e-3, rtol=5e-3), float(
        jnp.max(jnp.abs(out - z_ref))
    )

    print("KERNEL_OK")
</pallas_src>

<mosaic_0001>
module attributes {stable_mosaic.version = 11 : i64} {
  func.func @_aggregate_kernel(%arg0: i32, %arg1: i32, %arg2: memref<128x128xbf16, #tpu.memory_space<vmem>>, %arg3: memref<128x128xbf16, #tpu.memory_space<vmem>>, %arg4: memref<128x128xf32, #tpu.memory_space<vmem>>, %arg5: memref<128x128xf32, #tpu.memory_space<vmem>>) attributes {dimension_semantics = [#tpu.dimension_semantics<parallel>, #tpu.dimension_semantics<arbitrary>], iteration_bounds = array<i64: 2, 2>, scalar_prefetch = 0 : i64, scratch_operands = 1 : i64, tpu.core_type = #tpu.core_type<tc>, window_params = [{transform_indices = @transform_0, window_bounds = array<i64: 128, 128>}, {transform_indices = @transform_1, window_bounds = array<i64: 128, 128>}, {transform_indices = @transform_2, window_bounds = array<i64: 128, 128>}]} {
    %c0_i32 = arith.constant 0 : i32
    %0 = arith.cmpi eq, %arg1, %c0_i32 : i32
    %1 = arith.extui %0 : i1 to i32
    %c0_i32_0 = arith.constant 0 : i32
    %2 = arith.cmpi ne, %1, %c0_i32_0 : i32
    scf.if %2 {
      %cst_9 = arith.constant 0.000000e+00 : f32
      %12 = vector.broadcast %cst_9 : f32 to vector<128x128xf32>
      %c0_10 = arith.constant 0 : index
      %c0_11 = arith.constant 0 : index
      %13 = vector.load %arg5[%c0_10, %c0_11] : memref<128x128xf32, #tpu.memory_space<vmem>>, vector<128x128xf32>
      tpu.vector_store %arg5[%c0_10, %c0_11], %12 {strides = array<i32>} : memref<128x128xf32, #tpu.memory_space<vmem>>, vector<128x128xf32>,
    } else {
    }
    %c0 = arith.constant 0 : index
    %c0_1 = arith.constant 0 : index
    %3 = vector.load %arg5[%c0, %c0_1] : memref<128x128xf32, #tpu.memory_space<vmem>>, vector<128x128xf32>
    %c0_2 = arith.constant 0 : index
    %c0_3 = arith.constant 0 : index
    %4 = vector.load %arg2[%c0_2, %c0_3] : memref<128x128xbf16, #tpu.memory_space<vmem>>, vector<128x128xbf16>
    %c0_4 = arith.constant 0 : index
    %c0_5 = arith.constant 0 : index
    %5 = vector.load %arg3[%c0_4, %c0_5] : memref<128x128xbf16, #tpu.memory_space<vmem>>, vector<128x128xbf16>
    %cst = arith.constant dense<0.000000e+00> : vector<128x128xf32>
    %6 = tpu.matmul %4, %5, %cst {dimension_numbers = #tpu.dot_dimension_numbers<[1], [0], [0], [1], [0, 0, 1, 1], [], []>} : vector<128x128xbf16>, vector<128x128xbf16>, vector<128x128xf32> -> vector<128x128xf32>
    %7 = arith.addf %3, %6 : vector<128x128xf32>
    %c0_6 = arith.constant 0 : index
    %c0_7 = arith.constant 0 : index
    %8 = vector.load %arg5[%c0_6, %c0_7] : memref<128x128xf32, #tpu.memory_space<vmem>>, vector<128x128xf32>
    tpu.vector_store %arg5[%c0_6, %c0_7], %7 {strides = array<i32>} : memref<128x128xf32, #tpu.memory_space<vmem>>, vector<128x128xf32>,
    %c1_i32 = arith.constant 1 : i32
    %9 = arith.cmpi eq, %arg1, %c1_i32 : i32
    %10 = arith.extui %9 : i1 to i32
    %c0_i32_8 = arith.constant 0 : i32
    %11 = arith.cmpi ne, %10, %c0_i32_8 : i32
    scf.if %11 {
      %c0_9 = arith.constant 0 : index
      %c0_10 = arith.constant 0 : index
      %12 = vector.load %arg5[%c0_9, %c0_10] : memref<128x128xf32, #tpu.memory_space<vmem>>, vector<128x128xf32>
      %cst_11 = arith.constant 0.000000e+00 : f32
      %13 = vector.broadcast %cst_11 : f32 to vector<128x128xf32>
      %14 = arith.cmpf ogt, %12, %13 : vector<128x128xf32>
      %cst_12 = arith.constant 0.000000e+00 : f32
      %15 = vector.broadcast %cst_12 : f32 to vector<128x128xf32>
      %16 = arith.minimumf %12, %15 : vector<128x128xf32>
      %17 = math.exp %16 : vector<128x128xf32>
      %cst_13 = arith.constant 1.000000e+00 : f32
      %18 = vector.broadcast %cst_13 : f32 to vector<128x128xf32>
      %19 = arith.subf %17, %18 : vector<128x128xf32>
      %20 = arith.select %14, %12, %19 : vector<128x128xi1>, vector<128x128xf32>
      %c0_14 = arith.constant 0 : index
      %c0_15 = arith.constant 0 : index
      %21 = vector.load %arg4[%c0_14, %c0_15] : memref<128x128xf32, #tpu.memory_space<vmem>>, vector<128x128xf32>
      tpu.vector_store %arg4[%c0_14, %c0_15], %20 {strides = array<i32>} : memref<128x128xf32, #tpu.memory_space<vmem>>, vector<128x128xf32>,
    } else {
    }
    return
  }
  func.func @transform_0(%arg0: i32, %arg1: i32) -> (i32, i32) {
    %c0_i32 = arith.constant 0 : i32
    return %arg0, %arg1 : i32, i32
  }
  func.func @transform_1(%arg0: i32, %arg1: i32) -> (i32, i32) {
    %c0_i32 = arith.constant 0 : i32
    %c0_i32_0 = arith.constant 0 : i32
    return %arg1, %c0_i32 : i32, i32
  }
  func.func @transform_2(%arg0: i32, %arg1: i32) -> (i32, i32) {
    %c0_i32 = arith.constant 0 : i32
    %c0_i32_0 = arith.constant 0 : i32
    return %arg0, %c0_i32 : i32, i32
  }
}

</mosaic_0001>

<bundles_post_ra>
// kernel: tpu_custom_call.1
= control target key start
LH: loop header
LB: loop body
LE: loop exit
PB: predicated region body
PF: predicated region fallthrough
CT: control target
= control target key end

     0   :  { %s1715_s0 = inlined_call_operand.hbm [shape: bf16[256,256], index: 0, kind: input, shape index: {}]   ;;  %s1716_s1 = inlined_call_operand.hbm [shape: bf16[256,128], index: 1, kind: input, shape index: {}]   ;;  %s1717_s2 = inlined_call_operand.hbm [shape: f32[256,128], index: 2, kind: output, shape index: {}]  }
   0x1   :  { %1724 = sst [smem:[#allocation17_spill]] %s1715_s0 }
   0x2   :  { %1725 = sst [smem:[#allocation18_spill]] %s1716_s1 }
   0x3   :  { %1726 = sst [smem:[#allocation19_spill]] %s1717_s2 }
   0x4   :  { %7 = vsyncpa [#allocation4], 0 }
   0x5   :  { %9 = vsyncpa [#allocation4 + $0x1], 0 }
   0x6   :  { %10 = vsyncpa [#allocation7], 0 }
   0x7   :  { %12 = vsyncpa [#allocation7 + $0x1], 0 }
   0x8   :  { %13 = vsyncpa [#allocation5], 0 }
   0x9   :  { %15 = vsyncpa [#allocation5 + $0x1], 0  ;;  %s1306_s9 = smov 0   ;;  %s1308_s10 = smov 0  }
   0xa   :  { %s1310_s11 = smov 0   ;;  %s1312_s12 = smov 0  }
   0xb   :  { %s1314_s13 = smov 0   ;;  %s1316_s14 = smov 0  }
   0xc   :  { %s1318_s15 = smov 0   ;;  %s1320_s16 = smov 0  }
   0xd   :  { %s1322_s17 = smov 0   ;;  %s1324_s18 = smov 0  }
   0xe   :  { %s1326_s19 = smov 0   ;;  %s1328_s20 = smov 0  }
   0xf   :  { %s1330_s21 = smov 0   ;;  %s1332_s22 = smov 0  }
  0x10 LB: > { %1727 = sst [smem:[#allocation12_spill]] %s1228_s9  ;;  %s30_s23 = sadd.s32 1, %s1272_s20  ;;  %s1280_s22 = sphi %s1332_s22, %s21_s22   ;;  %s1276_s21 = sphi %s1330_s21, %s1767_s21   ;;  %s1272_s20 = sphi %s1328_s20, %s1766_s20   ;;  %s1268_s19 = sphi %s1326_s19, %s1765_s19   ;;  %s1264_s18 = sphi %s1324_s18, %s1764_s18   ;;  %s1260_s17 = sphi %s1322_s17, %s1763_s17   ;;  %s1256_s16 = sphi %s1320_s16, %s1762_s16   ;;  %s1252_s15 = sphi %s1318_s15, %s1761_s15   ;;  %s1248_s14 = sphi %s1316_s14, %s1760_s14   ;;  %s1244_s13 = sphi %s1314_s13, %s1759_s13   ;;  %s1240_s12 = sphi %s1312_s12, %s1758_s12   ;;  %s1236_s11 = sphi %s1310_s11, %s1757_s11   ;;  %s1232_s10 = sphi %s1308_s10, %s1756_s10   ;;  %s1228_s9 = sphi %s1306_s9, %s1755_s9  }
  0x11   : > { %1728 = sst [smem:[#allocation13_spill]] %s1264_s18  ;;  %s33_s24 = sadd.s32 1, %s1276_s21 }
  0x12   : > { %1729 = sst [smem:[#allocation14_spill]] %s1268_s19  ;;  %p31_p0 = scmp.ge.s32.totalorder %s30_s23, 2 }
  0x13   : > { %s42_s25 = sadd.s32 1, %s1260_s17  ;;  %p49_p1 = scmp.ne.s32.totalorder %s1260_s17, %s1256_s16 }
  0x14   : > { %p50_p2 = scmp.eq.s32.totalorder %s1280_s22, 0  ;;  %s1769_s23 = smov (%p31_p0, %s30_s23), 0 }
  0x15   : > { %1730 = sst [smem:[#allocation15_spill]] %s1769_s23  ;;  %s1771_s24 = smov (!%p31_p0, %s33_s24), %s1276_s21 }
  0x16   : > { %s1387_s26 = ssub.s32 %s1272_s20, %s1769_s23  ;;  %p1391_p3 = por %p50_p2, %p49_p1 }
  0x17   : > { %p35_p4 = scmp.ge.s32.totalorder %s1771_s24, 2  ;;  %p55_p5 = scmp.ne.s32.totalorder %s1256_s16, %s1252_s15 }
  0x18   : > { %p66_p6 = scmp.eq.s32.totalorder %s1387_s26, 0  ;;  %s94_s28 = sadd.s32 1, %s1236_s11 }
  0x19   : > { %s1773_s24 = smov (%p35_p4, %s1771_s24), 0  ;;  %p1720_p7 = scmp.lt.s32.totalorder %s1280_s22, 4 }
  0x1a   : > { %1732 = sst [smem:[#allocation16_spill]] %s1773_s24  ;;  %s37_s29 = ssub.s32 %s1276_s21, %s1773_s24 }
  0x1b   : > { %s131_s30 = sand.u32 1, %s1260_s17   ;;  %s39_s3 = sor.u32 %s1387_s26, %s37_s29 }
  0x1c   : > { %p92_p8 = scmp.eq.s32.totalorder %s37_s29, 0  ;;  %p40_p9 = scmp.eq.s32.totalorder %s39_s3, 0 }
  0x1d   : > { %s774_s6 = sshll.u32 %s131_s30, 6  ;;  %s824_s7 = sshll.u32 %s1276_s21, 5 }
  0x1e   : > { %s1407_s4 = scalar_select %p92_p8, %s1236_s11, %s94_s28  }
  0x1f   : > { %s1410_s5 = scalar_select %p40_p9, %s1260_s17, %s42_s25  }
  0x20   : > { %s141_s8 = sadd.s32 %s1272_s20, %s824_s7  ;;  %s135_s2 = scalar_lea.vmem [#allocation3], %s774_s6 }
  0x21   : > { %s777_s23 = sshll.u32 %s141_s8, 6  ;;  %s144_s19 = sshll.u32 %s135_s2, 4  ;;  %s145_s19 = int_to_ptr.vmem [resolvable:$true] %s144_s19 }
  0x22   : > { %s1733_s0 = sld [smem:[#allocation17_spill]]  ;;  %p1421_p10 = pnand %p1720_p7, %p1391_p3 }
  0x23   : > { %p781_p11 = scmp.ge.s32.totalorder %s1280_s22, 1  ;;  %s132_s25 = scalar_lea.sflag [#allocation4], %s131_s30 }
  0x24   : > { %p1078_p12 = pneg %p1421_p10  ;;  %s1089_s28 = scalar_lea.vmem %s145_s19, 1024 }
  0x25   : > { %p1090_p13 = scmp.ne.s32.totalorder %s145_s19, %s1089_s28  ;;  %s1282_s2 = smov [#allocation3]  }
  0x26   : > { %s1094_s3 = sshll.u32 %s1282_s2, 4  ;;  %s1095_s3 = int_to_ptr.vmem [resolvable:$false] %s1094_s3 }
  0x27   : > { %p1092_p0 = pnand %p1090_p13, %p1078_p12  ;;  %s1096_s1 = scalar_lea.vmem %s1095_s3, 2048 }
  0x28   : > { %s143_s9 = scalar_lea.hbm %s1733_s0, %s777_s23  ;;  %p1097_p4 = scmp.lt.s32.totalorder %s145_s19, %s1095_s3 }
  0x29   : > { %p1093_p1 = pneg %p1092_p0  ;;  %p1098_p8 = scmp.lt.s32.totalorder %s1096_s1, %s1089_s28 }
  0x2b   : > { %p1099_p9 = por %p1098_p8, %p1097_p4 }
  0x2d   : > { %p1100_p3 = pnand %p1099_p9, %p1093_p1 }
  0x2f   : > { %1103 = shalt.err (!%p1100_p3)
}
  0x30   : > { %s1283_s18 = smov 128   ;;  %s1721_s23 = smov 64  }
  0x31   : > { %s1722_s27 = smov 4   ;;  %s1735_s30 = sld [smem:[#allocation12_spill]] }
  0x32   : > { %900 = dma.hbm_to_vmem [thread:$0]  (!%p1421_p10), %s143_s9, 1024, %s145_s19, %s132_s25, %s1283_s18, %s1721_s23, %s1722_s27  }
  0x33   : > { %p173_p12 = scmp.lt.s32.totalorder %s1280_s22, 5  ;;  %s770_s7 = sadd.s32 4294967295, %s1280_s22  }
  0x34   : > { %s771_s8 = sadd.s32 4294967294, %s1280_s22   ;;  %p56_p0 = scmp.eq.s32.totalorder %s770_s7, 0 }
  0x35   : > { %p1435_p13 = pnand %p781_p11, %p173_p12  ;;  %s68_s28 = sadd.s32 1, %s1248_s14 }
  0x36   : > { %s1445_s2 = scalar_select %p66_p6, %s1248_s14, %s68_s28  }
  0x37   : > { %p1450_p1 = por %p56_p0, %p55_p5  ;;  %p75_p10 = scmp.ne.s32.totalorder %s1248_s14, %s1244_s13 }
  0x38   : > { %p81_p11 = scmp.ne.s32.totalorder %s1244_s13, %s1240_s12  ;;  %p104_p4 = scmp.ne.s32.totalorder %s1236_s11, %s1232_s10 }
  0x39   : > { %p77_p8 = por %p75_p10, %p50_p2  ;;  %p105_p9 = scmp.eq.s32.totalorder %s770_s7, 3 }
  0x3a   : > { %p1462_p3 = por %p81_p11, %p56_p0  ;;  %p110_p12 = scmp.ne.s32.totalorder %s1232_s10, %s1735_s30 }
  0x3b   : > { %p1468_p7 = por %p105_p9, %p104_p4  ;;  %p111_p6 = scmp.eq.s32.totalorder %s771_s8, 3 }
  0x3c   : > { %s154_s15 = sand.u32 1, %s1248_s14   ;;  %s825_s26 = sshll.u32 %s1272_s20, 10 }
  0x3d   : > { %p1474_p5 = por %p111_p6, %p110_p12  ;;  %s778_s12 = sshll.u32 %s154_s15, 6 }
  0x3e   : > { %s1741_s18 = sld [smem:[#allocation18_spill]]  ;;  %p1742_p2 = scmp.lt.s32.totalorder %s1280_s22, 4 }
  0x3f   : > { %s158_s30 = scalar_lea.vmem [#allocation6], %s778_s12  ;;  %s155_s8 = scalar_lea.sflag [#allocation7], %s154_s15 }
  0x40   : > { %p1483_p0 = pnand %p1742_p2, %p77_p8  ;;  %s165_s23 = sshll.u32 %s158_s30, 4  ;;  %s166_s23 = int_to_ptr.vmem [resolvable:$true] %s165_s23 }
  0x41   : > { %s1117_s27 = scalar_lea.vmem %s166_s23, 1024  ;;  %s1286_s0 = smov [#allocation6]  }
  0x42   : > { %p1106_p10 = pneg %p1483_p0  ;;  %p1118_p11 = scmp.ne.s32.totalorder %s166_s23, %s1117_s27 }
  0x43   : > { %s1122_s24 = sshll.u32 %s1286_s0, 4  ;;  %s1123_s24 = int_to_ptr.vmem [resolvable:$false] %s1122_s24 }
  0x44   : > { %s164_s7 = scalar_lea.hbm %s1741_s18, %s825_s26  ;;  %p1120_p4 = pnand %p1118_p11, %p1106_p10 }
  0x45   : > { %s1124_s26 = scalar_lea.vmem %s1123_s24, 2048  ;;  %p1125_p12 = scmp.lt.s32.totalorder %s166_s23, %s1123_s24 }
  0x46   : > { %p1121_p9 = pneg %p1120_p4  ;;  %p1126_p8 = scmp.lt.s32.totalorder %s1124_s26, %s1117_s27 }
  0x48   : > { %p1127_p6 = por %p1126_p8, %p1125_p12 }
  0x4a   : > { %p1128_p2 = pnand %p1127_p6, %p1121_p9 }
  0x4c   : > { %1131 = shalt.err (!%p1128_p2)
}
  0x4d   : > { %s1744_s12 = smov 4   ;;  %s1745_s3 = smov 64  }
  0x4e   : > { %903 = dma.hbm_to_vmem [thread:$0]  (!%p1483_p0), %s164_s7, 1024, %s166_s23, %s155_s8, %s1745_s3, %s1745_s3, %s1744_s12  }
  0x4f   : > { %177 = sbr.rel (%p1435_p13) target bundleno = 418 (0x1a2), region = 28  ;;  %s179_s15 = sand.u32 (!%p1435_p13), 1, %s1256_s16  }
  0x50   : > { %s782_s0 = sshll.u32 (!%p1435_p13), %s179_s15, 6  ;;  %s180_s1 = scalar_lea.sflag (!%p1435_p13), [#allocation4], %s179_s15 }
  0x51   : > { %s1497_s18 = scalar_lea.vmem (!%p1435_p13), [#allocation3], %s782_s0 }
  0x54   : > { %1215 = dma.done.wait (%p1450_p1), %s180_s1, 1024  }
  0x55   : > { %1217 = vsyncadd (%p1450_p1), %s180_s1, 4294966272  ;;  %s188_s24 = sand.u32 1, %s1244_s13  }
  0x56   : > { %s783_s27 = sshll.u32 %s188_s24, 6  ;;  %s189_s23 = scalar_lea.sflag [#allocation7], %s188_s24 }
  0x57   : > { %s1504_s7 = scalar_lea.vmem [#allocation6], %s783_s27 }
  0x58   : > { %1219 = dma.done.wait (%p1462_p3), %s189_s23, 1024  }
  0x59   : > { %1221 = vsyncadd (%p1462_p3), %s189_s23, 4294966272  ;;  %s215_s6 = sand.u32 1, %s1232_s10   ;;  %s1746_s29 = sld [smem:[#allocation13_spill]] }
  0x5a   : > { %s784_s28 = sshll.u32 %s215_s6, 7 }
  0x5b   : > { %s1513_s30 = scalar_lea.vmem [#allocation8], %s784_s28 }
  0x5f   : > { %p785_p13 = scmp.ne.s32.totalorder %s1746_s29, 0 }
  0x61   : > { %225 = sbr.rel (%p785_p13) target bundleno = 111 (0x6f), region = 40 }
  0x66   : > { %v1287_v0 = vmov 0.0  }
  0x67   : > { %226 = vst [vmem:[#allocation2 + $0x30] sm:$0xff] %v1287_v0  ;;  %227 = vst [vmem:[#allocation2] sm:$0xff] %v1287_v0 }
  0x68   : > { %228 = vst [vmem:[#allocation2 + $0x58] sm:$0xff] %v1287_v0  ;;  %229 = vst [vmem:[#allocation2 + $0x18] sm:$0xff] %v1287_v0 }
  0x69   : > { %230 = vst [vmem:[#allocation2 + $0x50] sm:$0xff] %v1287_v0  ;;  %231 = vst [vmem:[#allocation2 + $0x68] sm:$0xff] %v1287_v0 }
  0x6a   : > { %232 = vst [vmem:[#allocation2 + $0x8] sm:$0xff] %v1287_v0  ;;  %233 = vst [vmem:[#allocation2 + $0x48] sm:$0xff] %v1287_v0 }
  0x6b   : > { %234 = vst [vmem:[#allocation2 + $0x40] sm:$0xff] %v1287_v0  ;;  %235 = vst [vmem:[#allocation2 + $0x20] sm:$0xff] %v1287_v0 }
  0x6c   : > { %236 = vst [vmem:[#allocation2 + $0x10] sm:$0xff] %v1287_v0  ;;  %237 = vst [vmem:[#allocation2 + $0x38] sm:$0xff] %v1287_v0 }
  0x6d   : > { %238 = vst [vmem:[#allocation2 + $0x60] sm:$0xff] %v1287_v0  ;;  %239 = vst [vmem:[#allocation2 + $0x70] sm:$0xff] %v1287_v0 }
  0x6e   : > { %240 = vst [vmem:[#allocation2 + $0x78] sm:$0xff] %v1287_v0  ;;  %241 = vst [vmem:[#allocation2 + $0x28] sm:$0xff] %v1287_v0 }
  0x6f PF: > { %v1028_v1 = vld [vmem:[%s1504_s7 + $0x38] sm:$0xff]   ;;  %v1029_v2 = vld [vmem:[%s1504_s7 + $0x30] sm:$0xff]   ;;  %v1030_v3 = vld [vmem:[%s1504_s7 + $0x28] sm:$0xff]   ;;  %s1747_s9 = sld [smem:[#allocation13_spill]] }
  0x70   : > { %843 = vmatprep.subr.bf16.mxu0 %v1028_v1  ;;  %875 = vmatprep.subr.bf16.mxu1 %v1028_v1  ;;  %v1031_v4 = vld [vmem:[%s1504_s7 + $0x20] sm:$0xff]   ;;  %v1032_v7 = vld [vmem:[%s1504_s7 + $0x18] sm:$0xff]   ;;  %v1033_v8 = vld [vmem:[%s1504_s7 + $0x10] sm:$0xff]  }
  0x71   : > { %844 = vmatpush3.bf16.msra.mxu0 %v1028_v1  ;;  %883 = vmatpush3.bf16.msra.mxu1 %v1028_v1  ;;  %v1036_v5 = vld [vmem:[%s1497_s18] sm:$0xff]   ;;  %v1034_v9 = vld [vmem:[%s1504_s7 + $0x8] sm:$0xff]   ;;  %v1040_v13 = vld [vmem:[%s1497_s18 + $0x10] sm:$0xff]  }
  0x72   : > { %845 = vmatprep.subr.bf16.mxu0 %v1029_v2  ;;  %876 = vmatprep.subr.bf16.mxu1 %v1029_v2  ;;  %v1037_v6 = vld [vmem:[%s1497_s18 + $0x20] sm:$0xff]   ;;  %v1038_v11 = vld [vmem:[%s1497_s18 + $0x8] sm:$0xff]   ;;  %v1041_v14 = vld [vmem:[%s1497_s18 + $0x30] sm:$0xff]  }
  0x73   : > { %859 = vmatprep.mubr.bf16.mxu0 %v1036_v5  ;;  %867 = vmatprep.mubr.bf16.mxu1 %v1037_v6  ;;  %v1035_v10 = vld [vmem:[%s1504_s7] sm:$0xff]   ;;  %v1039_v12 = vld [vmem:[%s1497_s18 + $0x28] sm:$0xff]   ;;  %v1042_v15 = vld [vmem:[%s1497_s18 + $0x18] sm:$0xff]  }
  0x74   : > { %v1043_v16 = vld [vmem:[%s1497_s18 + $0x38] sm:$0xff]   ;;  %v252_v18 = vld [vmem:[#allocation2 + $0x10] sm:$0xff]  ;;  %v250_v22 = vld [vmem:[#allocation2 + $0x40] sm:$0xff] }
  0x75   : > { %846 = vmatpush3.bf16.msra.mxu0 %v1029_v2  ;;  %884 = vmatpush3.bf16.msra.mxu1 %v1029_v2  ;;  %v244_v17 = vld [vmem:[#allocation2 + $0x58] sm:$0xff]  ;;  %v242_v21 = vld [vmem:[#allocation2 + $0x30] sm:$0xff]  ;;  %v243_v33 = vld [vmem:[#allocation2] sm:$0xff]  ;;  %p802_p1 = scmp.ne.s32.totalorder %s1747_s9, 1 }
  0x76   : > { %847 = vmatprep.subr.bf16.mxu0 %v1030_v3  ;;  %877 = vmatprep.subr.bf16.mxu1 %v1030_v3  ;;  %v245_v27 = vld [vmem:[#allocation2 + $0x18] sm:$0xff]  ;;  %v251_v34 = vld [vmem:[#allocation2 + $0x20] sm:$0xff]  ;;  %v248_v39 = vld [vmem:[#allocation2 + $0x8] sm:$0xff] }
  0x77   : > { %v253_v28 = vld [vmem:[#allocation2 + $0x38] sm:$0xff]  ;;  %v246_v45 = vld [vmem:[#allocation2 + $0x50] sm:$0xff]  ;;  %v254_v46 = vld [vmem:[#allocation2 + $0x60] sm:$0xff] }
  0x78   : > { %v256_v40 = vld [vmem:[#allocation2 + $0x78] sm:$0xff]  ;;  %v249_v51 = vld [vmem:[#allocation2 + $0x48] sm:$0xff]  ;;  %v255_v58 = vld [vmem:[#allocation2 + $0x70] sm:$0xff] }
  0x79   : > { %848 = vmatpush3.bf16.msra.mxu0 %v1030_v3  ;;  %885 = vmatpush3.bf16.msra.mxu1 %v1030_v3  ;;  %v257_v52 = vld [vmem:[#allocation2 + $0x28] sm:$0xff] }
  0x7a   : > { %849 = vmatprep.subr.bf16.mxu0 %v1031_v4  ;;  %878 = vmatprep.subr.bf16.mxu1 %v1031_v4  ;;  %v247_v57 = vld [vmem:[#allocation2 + $0x68] sm:$0xff] }
  0x7d   : > { %850 = vmatpush3.bf16.msra.mxu0 %v1031_v4  ;;  %886 = vmatpush3.bf16.msra.mxu1 %v1031_v4 }
  0x7e   : > { %851 = vmatprep.subr.bf16.mxu0 %v1032_v7  ;;  %879 = vmatprep.subr.bf16.mxu1 %v1032_v7 }
  0x81   : > { %852 = vmatpush3.bf16.msra.mxu0 %v1032_v7  ;;  %887 = vmatpush3.bf16.msra.mxu1 %v1032_v7 }
  0x82   : > { %853 = vmatprep.subr.bf16.mxu0 %v1033_v8  ;;  %880 = vmatprep.subr.bf16.mxu1 %v1033_v8 }
  0x85   : > { %854 = vmatpush3.bf16.msra.mxu0 %v1033_v8  ;;  %888 = vmatpush3.bf16.msra.mxu1 %v1033_v8 }
  0x86   : > { %855 = vmatprep.subr.bf16.mxu0 %v1034_v9  ;;  %881 = vmatprep.subr.bf16.mxu1 %v1034_v9 }
  0x89   : > { %856 = vmatpush3.bf16.msra.mxu0 %v1034_v9  ;;  %889 = vmatpush3.bf16.msra.mxu1 %v1034_v9 }
  0x8a   : > { %857 = vmatprep.subr.bf16.mxu0 %v1035_v10  ;;  %882 = vmatprep.subr.bf16.mxu1 %v1035_v10 }
  0x8d   : > { %858 = vmatpush3.bf16.msra.mxu0 %v1035_v10  ;;  %890 = vmatpush3.bf16.msra.mxu1 %v1035_v10 }
  0x90   : > { %860 = vmatmul.mubr.bf16.vlgmr.msra.gmra.mxu0 %v1038_v11  ;;  %868 = vmatmul.mubr.bf16.vlgmr.msra.gmra.mxu1 %v1039_v12 }
  0x91   : > { %863 = vmatprep.mubr.bf16.mxu0 %v1040_v13  ;;  %871 = vmatprep.mubr.bf16.mxu1 %v1041_v14 }
  0x98   : > { %864 = vmatmul.mubr.bf16.gmra.mxu0 %v1042_v15  ;;  %872 = vmatmul.mubr.bf16.gmra.mxu1 %v1043_v16 }
 0x150   : > { %v861_v19 = vpop.f32.mrf.mxu0  ;;  %v869_v20 = vpop.f32.mrf.mxu1 }
 0x151   : > { %v485_v23 = vadd.f32 %v861_v19, %v244_v17  ;;  %v493_v24 = vadd.f32 %v869_v20, %v252_v18 }
 0x152   : > { %v420_v25 = vpop.f32.mrf.mxu0  ;;  %v452_v26 = vpop.f32.mrf.mxu1 }
 0x153   : > { %501 = vst [vmem:[#allocation2 + $0x58] sm:$0xff] %v485_v23  ;;  %509 = vst [vmem:[#allocation2 + $0x10] sm:$0xff] %v493_v24  ;;  %v483_v29 = vadd.f32 %v420_v25, %v242_v21  ;;  %v491_v30 = vadd.f32 %v452_v26, %v250_v22 }
 0x154   : > { %v862_v31 = vpop.f32.mrf.mxu0  ;;  %v870_v32 = vpop.f32.mrf.mxu1 }
 0x155   : > { %499 = vst [vmem:[#allocation2 + $0x30] sm:$0xff] %v483_v29  ;;  %507 = vst [vmem:[#allocation2 + $0x40] sm:$0xff] %v491_v30  ;;  %v486_v35 = vadd.f32 %v862_v31, %v245_v27  ;;  %v494_v36 = vadd.f32 %v870_v32, %v253_v28 }
 0x156   : > { %v423_v37 = vpop.f32.mrf.mxu0  ;;  %v455_v38 = vpop.f32.mrf.mxu1 }
 0x157   : > { %502 = vst [vmem:[#allocation2 + $0x18] sm:$0xff] %v486_v35  ;;  %510 = vst [vmem:[#allocation2 + $0x38] sm:$0xff] %v494_v36  ;;  %v484_v41 = vadd.f32 %v423_v37, %v243_v33  ;;  %v492_v42 = vadd.f32 %v455_v38, %v251_v34 }
 0x158   : > { %v865_v43 = vpop.f32.mrf.mxu0  ;;  %v873_v44 = vpop.f32.mrf.mxu1 }
 0x159   : > { %500 = vst [vmem:[#allocation2] sm:$0xff] %v484_v41  ;;  %508 = vst [vmem:[#allocation2 + $0x20] sm:$0xff] %v492_v42  ;;  %v489_v47 = vadd.f32 %v865_v43, %v248_v39  ;;  %v497_v48 = vadd.f32 %v873_v44, %v256_v40 }
 0x15a   : > { %v436_v49 = vpop.f32.mrf.mxu0  ;;  %v468_v50 = vpop.f32.mrf.mxu1 }
 0x15b   : > { %505 = vst [vmem:[#allocation2 + $0x8] sm:$0xff] %v489_v47  ;;  %513 = vst [vmem:[#allocation2 + $0x78] sm:$0xff] %v497_v48  ;;  %v487_v53 = vadd.f32 %v436_v49, %v246_v45  ;;  %v495_v54 = vadd.f32 %v468_v50, %v254_v46 }
 0x15c   : > { %v866_v55 = vpop.f32.mrf.mxu0  ;;  %v874_v56 = vpop.f32.mrf.mxu1 }
 0x15d   : > { %503 = vst [vmem:[#allocation2 + $0x50] sm:$0xff] %v487_v53  ;;  %511 = vst [vmem:[#allocation2 + $0x60] sm:$0xff] %v495_v54  ;;  %v490_v59 = vadd.f32 %v866_v55, %v249_v51  ;;  %v498_v60 = vadd.f32 %v874_v56, %v257_v52  ;;  %518 = sbr.rel (%p802_p1) target bundleno = 393 (0x189), region = 44 }
 0x15e   : > { %v439_v61 = vpop.f32.mrf.mxu0  ;;  %v471_v62 = vpop.f32.mrf.mxu1 }
 0x15f   : > { %506 = vst [vmem:[#allocation2 + $0x48] sm:$0xff] %v490_v59  ;;  %514 = vst [vmem:[#allocation2 + $0x28] sm:$0xff] %v498_v60  ;;  %v488_v63 = vadd.f32 %v439_v61, %v247_v57  ;;  %v496_v0 = vadd.f32 %v471_v62, %v255_v58 }
 0x161   : > { %504 = vst [vmem:[#allocation2 + $0x68] sm:$0xff] %v488_v63  ;;  %512 = vst [vmem:[#allocation2 + $0x70] sm:$0xff] %v496_v0 }
 0x162   : > { %v1533_v1 = vld [vmem:[#allocation2 + $0x30] sm:$0xff]  ;;  %v1535_v2 = vld [vmem:[#allocation2] sm:$0xff]  ;;  %v1537_v3 = vld [vmem:[#allocation2 + $0x58] sm:$0xff] }
 0x163   : > { %v551_v4 = vmin.f32 %v1533_v1, 0.0  ;;  %v552_v5 = vmin.f32 %v1535_v2, 0.0  ;;  %v1541_v6 = vld [vmem:[#allocation2 + $0x18] sm:$0xff]  ;;  %v553_v8 = vmin.f32 %v1537_v3, 0.0  ;;  %v1549_v11 = vld [vmem:[#allocation2 + $0x8] sm:$0xff]  ;;  %v1556_v21 = vld [vmem:[#allocation2 + $0x40] sm:$0xff] }
 0x164   : > { %v1543_v7 = vld [vmem:[#allocation2 + $0x50] sm:$0xff]  ;;  %v554_v9 = vmin.f32 %v1541_v6, 0.0  ;;  %v557_v19 = vmin.f32 %v1549_v11, 0.0  ;;  %v1559_v24 = vld [vmem:[#allocation2 + $0x20] sm:$0xff]  ;;  %v559_v27 = vmin.f32 %v1556_v21, 0.0  ;;  %v1564_v28 = vld [vmem:[#allocation2 + $0x38] sm:$0xff] }
 0x165   : > { %v567_v12 = vmul.f32 1.442695, %v551_v4  ;;  %v569_v13 = vmul.f32 1.442695, %v552_v5  ;;  %v555_v14 = vmin.f32 %v1543_v7, 0.0  ;;  %v1561_v25 = vld [vmem:[#allocation2 + $0x10] sm:$0xff] }
 0x166   : > { %v571_v15 = vmul.f32 1.442695, %v553_v8  ;;  %v573_v16 = vmul.f32 1.442695, %v554_v9  ;;  %v1554_v20 = vld [vmem:[#allocation2 + $0x48] sm:$0xff]  ;;  %v560_v30 = vmin.f32 %v1559_v24, 0.0 }
 0x167   : > { %1044 = vpow2.f32 %v567_v12  ;;  %v575_v18 = vmul.f32 1.442695, %v555_v14  ;;  %v558_v23 = vmin.f32 %v1554_v20, 0.0  ;;  %v579_v26 = vmul.f32 1.442695, %v557_v19  ;;  %v1567_v31 = vld [vmem:[#allocation2 + $0x60] sm:$0xff] }
 0x168   : > { %v1547_v10 = vld [vmem:[#allocation2 + $0x68] sm:$0xff]  ;;  %1046 = vpow2.f32 %v569_v13  ;;  %v583_v32 = vmul.f32 1.442695, %v559_v27  ;;  %v561_v33 = vmin.f32 %v1561_v25, 0.0  ;;  %v1570_v34 = vld [vmem:[#allocation2 + $0x70] sm:$0xff]  ;;  %v562_v36 = vmin.f32 %v1564_v28, 0.0 }
 0x169   : > { %v556_v17 = vmin.f32 %v1547_v10, 0.0  ;;  %1048 = vpow2.f32 %v571_v15  ;;  %v581_v29 = vmul.f32 1.442695, %v558_v23  ;;  %v585_v35 = vmul.f32 1.442695, %v560_v30  ;;  %v1573_v37 = vld [vmem:[#allocation2 + $0x78] sm:$0xff] }
 0x16a   : > { %1050 = vpow2.f32 %v573_v16  ;;  %v587_v38 = vmul.f32 1.442695, %v561_v33  ;;  %v563_v39 = vmin.f32 %v1567_v31, 0.0  ;;  %v1576_v40 = vld [vmem:[#allocation2 + $0x28] sm:$0xff]  ;;  %v589_v41 = vmul.f32 1.442695, %v562_v36 }
 0x16b   : > { %v577_v22 = vmul.f32 1.442695, %v556_v17  ;;  %1052 = vpow2.f32 %v575_v18  ;;  %v564_v42 = vmin.f32 %v1570_v34, 0.0  ;;  %v565_v44 = vmin.f32 %v1573_v37, 0.0 }
 0x16c   : > { %v591_v43 = vmul.f32 1.442695, %v563_v39  ;;  %v566_v46 = vmin.f32 %v1576_v40, 0.0  ;;  %vm535_vm0 = vcmp.gt.f32.partialorder %v1533_v1, 0.0  ;;  %vm536_vm1 = vcmp.gt.f32.partialorder %v1535_v2, 0.0 }
 0x16d   : > { %1054 = vpow2.f32 %v577_v22  ;;  %v593_v45 = vmul.f32 1.442695, %v564_v42  ;;  %v595_v47 = vmul.f32 1.442695, %v565_v44  ;;  %vm537_vm2 = vcmp.gt.f32.partialorder %v1537_v3, 0.0 }
 0x16e   : > { %1056 = vpow2.f32 %v579_v26  ;;  %v597_v48 = vmul.f32 1.442695, %v566_v46  ;;  %vm538_vm3 = vcmp.gt.f32.partialorder %v1541_v6, 0.0  ;;  %vm539_vm4 = vcmp.gt.f32.partialorder %v1543_v7, 0.0 }
 0x16f   : > { %1058 = vpow2.f32 %v581_v29  ;;  %vm540_vm5 = vcmp.gt.f32.partialorder %v1547_v10, 0.0  ;;  %vm541_vm6 = vcmp.gt.f32.partialorder %v1549_v11, 0.0  ;;  %vm542_vm7 = vcmp.gt.f32.partialorder %v1554_v20, 0.0 }
 0x170   : > { %1060 = vpow2.f32 %v583_v32  ;;  %vm543_vm8 = vcmp.gt.f32.partialorder %v1556_v21, 0.0  ;;  %vm544_vm9 = vcmp.gt.f32.partialorder %v1559_v24, 0.0  ;;  %vm545_vm10 = vcmp.gt.f32.partialorder %v1561_v25, 0.0 }
 0x171   : > { %1062 = vpow2.f32 %v585_v35  ;;  %vm546_vm11 = vcmp.gt.f32.partialorder %v1564_v28, 0.0  ;;  %vm547_vm12 = vcmp.gt.f32.partialorder %v1567_v31, 0.0  ;;  %vm548_vm13 = vcmp.gt.f32.partialorder %v1570_v34, 0.0 }
 0x172   : > { %1064 = vpow2.f32 %v587_v38  ;;  %vm549_vm14 = vcmp.gt.f32.partialorder %v1573_v37, 0.0  ;;  %vm550_vm15 = vcmp.gt.f32.partialorder %v1576_v40, 0.0 }
 0x173   : > { %1066 = vpow2.f32 %v589_v41 }
 0x174   : > { %1068 = vpow2.f32 %v591_v43  ;;  %v1045_v49 = vpop.eup %1044 }
 0x175   : > { %1070 = vpow2.f32 %v593_v45  ;;  %v1047_v50 = vpop.eup %1046  ;;  %v803_v51 = vadd.f32 -1.0, %v1045_v49 }
 0x176   : > { %1072 = vpow2.f32 %v595_v47  ;;  %v1049_v52 = vpop.eup %1048  ;;  %v804_v53 = vadd.f32 -1.0, %v1047_v50 }
 0x177   : > { %1074 = vpow2.f32 %v597_v48  ;;  %v1051_v54 = vpop.eup %1050  ;;  %v615_v55 = vsel %vm535_vm0, %v1533_v1, %v803_v51  ;;  %v805_v56 = vadd.f32 -1.0, %v1049_v52 }
 0x178   : > { %v1053_v57 = vpop.eup %1052  ;;  %631 = vst [vmem:[%s1513_s30] sm:$0xff] %v615_v55  ;;  %v616_v58 = vsel %vm536_vm1, %v1535_v2, %v804_v53  ;;  %v806_v59 = vadd.f32 -1.0, %v1051_v54 }
 0x179   : > { %632 = vst [vmem:[%s1513_s30 + $0x8] sm:$0xff] %v616_v58  ;;  %v617_v61 = vsel %vm537_vm2, %v1537_v3, %v805_v56  ;;  %v807_v62 = vadd.f32 -1.0, %v1053_v57 }
 0x17a   : > { %v1055_v60 = vpop.eup %1054  ;;  %633 = vst [vmem:[%s1513_s30 + $0x10] sm:$0xff] %v617_v61  ;;  %v618_v0 = vsel %vm538_vm3, %v1541_v6, %v806_v59 }
 0x17b   : > { %v1057_v63 = vpop.eup %1056  ;;  %v808_v1 = vadd.f32 -1.0, %v1055_v60  ;;  %634 = vst [vmem:[%s1513_s30 + $0x18] sm:$0xff] %v618_v0  ;;  %v619_v4 = vsel %vm539_vm4, %v1543_v7, %v807_v62 }
 0x17c   : > { %v1059_v2 = vpop.eup %1058  ;;  %v809_v5 = vadd.f32 -1.0, %v1057_v63  ;;  %635 = vst [vmem:[%s1513_s30 + $0x20] sm:$0xff] %v619_v4 }
 0x17d   : > { %v1061_v3 = vpop.eup %1060  ;;  %v620_v8 = vsel %vm540_vm5, %v1547_v10, %v808_v1  ;;  %v810_v9 = vadd.f32 -1.0, %v1059_v2 }
 0x17e   : > { %v1063_v6 = vpop.eup %1062  ;;  %636 = vst [vmem:[%s1513_s30 + $0x28] sm:$0xff] %v620_v8  ;;  %v621_v12 = vsel %vm541_vm6, %v1549_v11, %v809_v5  ;;  %v811_v13 = vadd.f32 -1.0, %v1061_v3 }
 0x17f   : > { %v1065_v7 = vpop.eup %1064  ;;  %637 = vst [vmem:[%s1513_s30 + $0x30] sm:$0xff] %v621_v12  ;;  %v622_v14 = vsel %vm542_vm7, %v1554_v20, %v810_v9  ;;  %v812_v15 = vadd.f32 -1.0, %v1063_v6 }
 0x180   : > { %v1067_v10 = vpop.eup %1066  ;;  %638 = vst [vmem:[%s1513_s30 + $0x38] sm:$0xff] %v622_v14  ;;  %v623_v16 = vsel %vm543_vm8, %v1556_v21, %v811_v13  ;;  %v813_v17 = vadd.f32 -1.0, %v1065_v7 }
 0x181   : > { %v1069_v11 = vpop.eup %1068  ;;  %639 = vst [vmem:[%s1513_s30 + $0x40] sm:$0xff] %v623_v16  ;;  %v624_v18 = vsel %vm544_vm9, %v1559_v24, %v812_v15  ;;  %v814_v19 = vadd.f32 -1.0, %v1067_v10 }
 0x182   : > { %v1071_v20 = vpop.eup %1070  ;;  %640 = vst [vmem:[%s1513_s30 + $0x48] sm:$0xff] %v624_v18  ;;  %v625_v22 = vsel %vm545_vm10, %v1561_v25, %v813_v17  ;;  %v815_v23 = vadd.f32 -1.0, %v1069_v11 }
 0x183   : > { %v1073_v21 = vpop.eup %1072  ;;  %641 = vst [vmem:[%s1513_s30 + $0x50] sm:$0xff] %v625_v22  ;;  %v626_v26 = vsel %vm546_vm11, %v1564_v28, %v814_v19  ;;  %v816_v27 = vadd.f32 -1.0, %v1071_v20 }
 0x184   : > { %v1075_v24 = vpop.eup %1074  ;;  %642 = vst [vmem:[%s1513_s30 + $0x58] sm:$0xff] %v626_v26  ;;  %v627_v29 = vsel %vm547_vm12, %v1567_v31, %v815_v23  ;;  %v817_v30 = vadd.f32 -1.0, %v1073_v21 }
 0x185   : > { %643 = vst [vmem:[%s1513_s30 + $0x60] sm:$0xff] %v627_v29  ;;  %v628_v25 = vsel %vm548_vm13, %v1570_v34, %v816_v27  ;;  %v818_v32 = vadd.f32 -1.0, %v1075_v24 }
 0x186   : > { %644 = vst [vmem:[%s1513_s30 + $0x68] sm:$0xff] %v628_v25  ;;  %v629_v33 = vsel %vm549_vm14, %v1573_v37, %v817_v30 }
 0x187   : > { %645 = vst [vmem:[%s1513_s30 + $0x70] sm:$0xff] %v629_v33  ;;  %v630_v28 = vsel %vm550_vm15, %v1576_v40, %v818_v32 }
 0x188   : > { %646 = vst [vmem:[%s1513_s30 + $0x78] sm:$0xff] %v630_v28 }
 0x189 PF: > { %s1748_s8 = sld [smem:[#allocation14_spill]]  ;;  %s661_s18 = sshll.u32 %s1513_s30, 4  ;;  %s1636_s18 = int_to_ptr.vmem [resolvable:$true] %s661_s18 }
 0x18a   : > { %s1749_s15 = sld [smem:[#allocation19_spill]]  ;;  %s1640_s24 = scalar_lea.sflag [#allocation5], %s215_s6 }
 0x18b   : > { %s1132_s27 = scalar_lea.vmem %s1636_s18, 2048  ;;  %s1288_s23 = smov [#allocation8]  }
 0x18c   : > { %p1133_p3 = scmp.ne.s32.totalorder %s1636_s18, %s1132_s27  ;;  %s1136_s7 = sshll.u32 %s1288_s23, 4  ;;  %s1137_s7 = int_to_ptr.vmem [resolvable:$false] %s1136_s7 }
 0x18d   : > { %s1138_s28 = scalar_lea.vmem %s1137_s7, 4096  ;;  %p1139_p11 = scmp.lt.s32.totalorder %s1636_s18, %s1137_s7 }
 0x18e   : > { %p1134_p0 = pnand %p1133_p3, %p1468_p7  ;;  %p1140_p4 = scmp.lt.s32.totalorder %s1138_s28, %s1132_s27 }
 0x18f   : > { %s826_s26 = sshll.u32 %s1748_s8, 11 }
 0x190   : > { %s1750_s0 = smov %s1749_s15  ;;  %s1633_s1 = scalar_lea.hbm %s1749_s15, %s826_s26 }
 0x191   : > { %p1135_p10 = pneg %p1134_p0  ;;  %p1141_p9 = por %p1140_p4, %p1139_p11 }
 0x193   : > { %p1142_p12 = pnand %p1141_p9, %p1135_p10 }
 0x195   : > { %1145 = shalt.err (!%p1142_p12)
}
 0x196   : > { %s1146_s6 = scalar_lea.hbm %s1633_s1, 2048  ;;  %s1150_s9 = scalar_lea.hbm %s1750_s0, 4096 }
 0x197   : > { %p1147_p8 = scmp.ne.s32.totalorder %s1633_s1, %s1146_s6  ;;  %p1151_p13 = scmp.lt.s32.totalorder %s1633_s1, %s1750_s0 }
 0x198   : > { %p1152_p1 = scmp.lt.s32.totalorder %s1150_s9, %s1146_s6 }
 0x199   : > { %p1148_p6 = pnand %p1147_p8, %p1468_p7 }
 0x19a   : > { %p1153_p3 = por %p1152_p1, %p1151_p13 }
 0x19b   : > { %p1149_p2 = pneg %p1148_p6 }
 0x19d   : > { %p1154_p0 = pnand %p1153_p3, %p1149_p2 }
 0x19f   : > { %1157 = shalt.err (!%p1154_p0)
}
 0x1a0   : > { %s1289_s12 = smov 128   ;;  %s1290_s3 = smov 8  }
 0x1a1   : > { %895 = dma.vmem_to_hbm [thread:$0]  (%p1468_p7), %s1636_s18, 2048, %s1633_s1, %s1640_s24, %s1289_s12, %s1289_s12, %s1290_s3  }
 0x1a2 PF: > { %s1751_s15 = sld [smem:[#allocation12_spill]]  ;;  %p909_p10 = scmp.ge.s32.totalorder %s1280_s22, 2 }
 0x1a4   : > { %p905_p11 = pnand %p909_p10, %p1474_p5 }
 0x1a6   : > { %p906_p4 = pneg %p905_p11 }
 0x1a8   : > { %s676_s27 = sand.u32 1, %s1751_s15  }
 0x1a9   : > { %s677_s23 = scalar_lea.sflag [#allocation5], %s676_s27 }
 0x1aa   : > { %1223 = dma.done.wait (%p906_p4), %s677_s23, 2048  }
 0x1ab   : > { %1225 = vsyncadd (%p906_p4), %s677_s23, 4294965248  ;;  %s21_s22 = sadd.s32 1, %s1280_s22   ;;  %s1753_s25 = sld [smem:[#allocation15_spill]] }
 0x1ac   : > { %p1668_p9 = scmp.ge.s32.totalorder %s21_s22, 6   ;;  %s1754_s1 = sld [smem:[#allocation16_spill]] }
 0x1ad   : > { %s1755_s9 = smov %s1232_s10  ;;  %s1756_s10 = smov %s1236_s11 }
 0x1ae   : > { %s1757_s11 = smov %s1407_s4  ;;  %s1758_s12 = smov %s1244_s13 }
 0x1af   : > { %s1759_s13 = smov %s1248_s14  ;;  %s1760_s14 = smov %s1445_s2 }
 0x1b0   : > { %s1761_s15 = smov %s1256_s16  ;;  %s1762_s16 = smov %s1260_s17 }
 0x1b1   : > { %s1763_s17 = smov %s1410_s5  ;;  %s1764_s18 = smov %s1272_s20 }
 0x1b2   : > { %s1765_s19 = smov %s1276_s21  ;;  %s1766_s20 = smov %s1753_s25 }
 0x1b3   : > { %s1767_s21 = smov %s1754_s1  ;;  %20 = sbr.rel (!%p1668_p9) target bundleno = 16 (0x10), region = 94 }
 0x1b8   :  { %682 = vsyncpa [#allocation4], 1 }
 0x1b9   :  { %684 = vsyncpa [#allocation4 + $0x1], 1 }
 0x1ba   :  { %685 = vsyncpa [#allocation7], 1 }
 0x1bb   :  { %687 = vsyncpa [#allocation7 + $0x1], 1 }
 0x1bc   :  { %688 = vsyncpa [#allocation5], 1 }
 0x1bd   :  { %690 = vsyncpa [#allocation5 + $0x1], 1 }

</bundles_post_ra>
